<compile_context>
chip_gen: v7x
topology: tpu7x:2x2x1
jax: 0.10.0
libtpu: 0.0.40
codegen_flags: <defaults>
</compile_context>

<pallas_src>
import functools

import jax
import jax.numpy as jnp
from jax.experimental import pallas as pl
from jax.experimental.pallas import tpu as pltpu


# ----------------------------------------------------------------------------- kernel

def _mh_attention_map_kernel(q_ref, k_ref, mask_ref, wq_ref, bq_ref,
                             wk_ref, bk_ref, o_ref, kbd_ref,
                             *, num_heads, fact, block_b):
    """Fused MHAttentionMap for `block_b` batch elements per grid step.

    q_ref    : (block_b, Q, Dq)        raw queries
    k_ref    : (block_b, Dq, S)        raw feature map, spatially flattened
    mask_ref : (block_b, 1, S) int32   key-padding mask (nonzero = masked out)
    wq_ref   : (Dq, E)                 q_linear weight, (in, out) layout
    bq_ref   : (1, E)                  q_linear bias
    wk_ref   : (E, Dq)                 k_linear weight, torch (out, in) layout
    bk_ref   : (E, 1)                  k_linear bias
    o_ref    : (block_b, Q, num_heads*S)  joint-softmaxed attention weights
    kbd_ref  : (E, num_heads*S) VMEM scratch for the block-diagonal k matrix
    """
    S = k_ref.shape[-1]
    E = wq_ref.shape[-1]
    dh = E // num_heads

    # Zero the block-diagonal scratch once; only the diagonal (dh, S) blocks
    # are ever rewritten afterwards, so the off-diagonal zeros persist across
    # batch elements and grid steps.
    @pl.when(pl.program_id(0) == 0)
    def _():
        kbd_ref[...] = jnp.zeros_like(kbd_ref)

    wq = wq_ref[...]
    bq = bq_ref[...]
    wk = wk_ref[...]
    bk = bk_ref[...]

    for i in range(block_b):                                  # static unroll
        q = q_ref[i]                                          # (Q, Dq)
        kf = k_ref[i]                                         # (Dq, S)

        # q projection (+ bias), then the 1/sqrt(dh) normalize factor.
        qp = (jnp.dot(q, wq, preferred_element_type=jnp.float32) + bq) * fact  # (Q, E)
        # k projection == 1x1 conv: (E, Dq) @ (Dq, S), lane-dense.
        kp = jnp.dot(wk, kf, preferred_element_type=jnp.float32) + bk          # (E, S)

        # Scatter kp into the block-diagonal RHS: aligned vreg placements
        # (dh=8-sublane, S=128k-lane offsets at these shapes).
        for h in range(num_heads):
            kbd_ref[h * dh:(h + 1) * dh, h * S:(h + 1) * S] = kp[h * dh:(h + 1) * dh, :]

        # Single K=E matmul -> head-major scores, already "concatenated"
        # (== torch weights.flatten(2) layout).
        s = jnp.dot(qp, kbd_ref[...], preferred_element_type=jnp.float32)  # (Q, NH*S)

        # Key-padding bias: build once, tile across heads once, broadcast over Q.
        # TODO(synk): -1e30 instead of -inf; only a fully-masked image differs
        #             (uniform weights here vs NaN in PyTorch).
        bias = jnp.where(mask_ref[i] != 0,
                         jnp.float32(-1e30), jnp.float32(0.0))             # (1, S)
        s = s + jnp.tile(bias, (1, num_heads))                             # (Q, NH*S)

        # Joint softmax over (heads, H, W) == the whole last dim.
        m = jnp.max(s, axis=-1, keepdims=True)
        p = jnp.exp(s - m)
        l = jnp.sum(p, axis=-1, keepdims=True)
        o_ref[i] = p * pl.reciprocal(l, approx=True)


# ----------------------------------------------------------------------------- wrapper

def _default_batch_grid(B):
    """2 balanced grid steps on 2-TensorCore chips (v7x), else a single step."""
    try:
        kind = jax.devices()[0].device_kind.lower()
    except Exception:
        kind = ""
    if "v7" in kind and B >= 2 and B % 2 == 0:
        return 2
    return 1


def mh_attention_map(q, k, wq, bq, wk, bk, num_heads, mask=None):
    """Pallas MHAttentionMap.forward.

    q    : (B, Q, query_dim)
    k    : (B, query_dim, H, W)
    wq,bq: q_linear params, torch layout wq=(hidden, query_dim), bq=(hidden,)
    wk,bk: k_linear params, torch layout wk=(hidden, query_dim), bk=(hidden,)
    mask : optional bool (B, H, W), True = masked out (key padding)
    returns (B, Q, num_heads, H, W) float32 attention weights
    """
    B, Q, Dq = q.shape
    _, _, H, W = k.shape
    E = wk.shape[0]
    dh = E // num_heads
    fact = float(dh) ** -0.5
    S = H * W
    # TODO(synk): if production H*W is not a multiple of 128 (e.g. DETR 25x34),
    #             pad S up to the next multiple of 128 with masked-out columns
    #             (bias -1e30) and slice the pad off after, to keep the score /
    #             output blocks lane-dense.

    kflat = k.reshape(B, Dq, S).astype(jnp.float32)
    if mask is not None:
        # int32 keeps the lane layout trivial; bytes are negligible vs kflat.
        mflat = mask.reshape(B, 1, S).astype(jnp.int32)
    else:
        mflat = jnp.zeros((B, 1, S), jnp.int32)

    n_steps = _default_batch_grid(B)
    block_b = B // n_steps

    kernel = functools.partial(_mh_attention_map_kernel,
                               num_heads=num_heads, fact=fact, block_b=block_b)
    out = pl.pallas_call(
        kernel,
        out_shape=jax.ShapeDtypeStruct((B, Q, num_heads * S), jnp.float32),
        grid=(n_steps,),
        in_specs=[
            pl.BlockSpec((block_b, Q, Dq), lambda b: (b, 0, 0)),
            pl.BlockSpec((block_b, Dq, S), lambda b: (b, 0, 0)),
            pl.BlockSpec((block_b, 1, S), lambda b: (b, 0, 0)),
            pl.BlockSpec((Dq, E), lambda b: (0, 0)),
            pl.BlockSpec((1, E), lambda b: (0, 0)),
            pl.BlockSpec((E, Dq), lambda b: (0, 0)),
            pl.BlockSpec((E, 1), lambda b: (0, 0)),
        ],
        out_specs=pl.BlockSpec((block_b, Q, num_heads * S), lambda b: (b, 0, 0)),
        scratch_shapes=[pltpu.VMEM((E, num_heads * S), jnp.float32)],
        compiler_params=pltpu.CompilerParams(dimension_semantics=("parallel",)),
    )(q.astype(jnp.float32), kflat, mflat,
      wq.T.astype(jnp.float32), bq.reshape(1, E).astype(jnp.float32),
      wk.astype(jnp.float32), bk.reshape(E, 1).astype(jnp.float32))
    return out.reshape(B, Q, num_heads, H, W)


# ----------------------------------------------------------------------------- reference

def mh_attention_map_ref(q, k, wq, bq, wk, bk, num_heads, mask=None):
    """Pure-JAX reference mirroring the PyTorch module."""
    B, Q, Dq = q.shape
    _, _, H, W = k.shape
    E = wk.shape[0]
    dh = E // num_heads
    fact = float(dh) ** -0.5
    qp = jnp.einsum('bqd,ed->bqe', q, wq, precision='highest') + bq
    kp = (jnp.einsum('ed,bdhw->behw', wk, k, precision='highest')
          + bk[None, :, None, None])
    qh = qp.reshape(B, Q, num_heads, dh)
    kh = kp.reshape(B, num_heads, dh, H, W)
    w = jnp.einsum('bqnc,bnchw->bqnhw', qh * fact, kh, precision='highest')
    if mask is not None:
        w = jnp.where(mask[:, None, None, :, :], -jnp.inf, w)
    wflat = jax.nn.softmax(w.reshape(B, Q, -1), axis=-1)
    return wflat.reshape(B, Q, num_heads, H, W)


# ----------------------------------------------------------------------------- main

if __name__ == "__main__":
    key = jax.random.PRNGKey(0)
    kq, kk, kwq, kwk, kbq, kbk = jax.random.split(key, 6)

    B, Q, Dq, E, NH, H, W = 2, 16, 32, 32, 4, 16, 16

    q = jax.random.normal(kq, (B, Q, Dq), jnp.float32)
    kfeat = jax.random.normal(kk, (B, Dq, H, W), jnp.float32)
    wq = jax.random.normal(kwq, (E, Dq), jnp.float32) * 0.1     # torch (out, in)
    wk = jax.random.normal(kwk, (E, Dq), jnp.float32) * 0.1
    bq = jax.random.normal(kbq, (E,), jnp.float32) * 0.1
    bk = jax.random.normal(kbk, (E,), jnp.float32) * 0.1

    # key padding mask: sample 0 unpadded, sample 1 padded on the right quarter
    yy, xx = jnp.meshgrid(jnp.arange(H), jnp.arange(W), indexing='ij')
    mask = jnp.stack([jnp.zeros((H, W), bool), xx >= 12])

    fwd = jax.jit(functools.partial(mh_attention_map, num_heads=NH))
    out = fwd(q, kfeat, wq, bq, wk, bk, mask=mask)
    out = jax.block_until_ready(out)

    ref = mh_attention_map_ref(q, kfeat, wq, bq, wk, bk, NH, mask)

    assert out.shape == (B, Q, NH, H, W)
    assert bool(jnp.isfinite(out).all())
    # each (batch, query) row is a joint distribution over (heads, H, W)
    # (atol loosened slightly for the EUP approx reciprocal in the normalize)
    assert bool(jnp.allclose(out.reshape(B, Q, -1).sum(-1), 1.0, atol=5e-3))
    # masked spatial positions get exactly zero weight
    assert bool(jnp.all(out[1, :, :, :, 12:] == 0.0))
    assert bool(jnp.allclose(out, ref, rtol=2e-2, atol=1e-4))
    print("KERNEL_OK")
</pallas_src>

<mosaic_0001>
module attributes {stable_mosaic.version = 11 : i64} {
  func.func @_mh_attention_map_kernel(%arg0: i32, %arg1: memref<2x16x32xf32, #tpu.memory_space<vmem>>, %arg2: memref<2x32x256xf32, #tpu.memory_space<vmem>>, %arg3: memref<2x1x256xi32, #tpu.memory_space<vmem>>, %arg4: memref<32x32xf32, #tpu.memory_space<vmem>>, %arg5: memref<1x32xf32, #tpu.memory_space<vmem>>, %arg6: memref<32x32xf32, #tpu.memory_space<vmem>>, %arg7: memref<32x1xf32, #tpu.memory_space<vmem>>, %arg8: memref<2x16x1024xf32, #tpu.memory_space<vmem>>, %arg9: memref<32x1024xf32, #tpu.memory_space<vmem>>) attributes {dimension_semantics = [#tpu.dimension_semantics<parallel>], iteration_bounds = array<i64: 1>, scalar_prefetch = 0 : i64, scratch_operands = 1 : i64, tpu.core_type = #tpu.core_type<tc>, window_params = [{transform_indices = @transform_0, window_bounds = array<i64: 2, 16, 32>}, {transform_indices = @transform_1, window_bounds = array<i64: 2, 32, 256>}, {transform_indices = @transform_2, window_bounds = array<i64: 2, 1, 256>}, {pipeline_mode = #tpu.pipeline_mode<synchronous>, transform_indices = @transform_3, window_bounds = array<i64: 32, 32>}, {pipeline_mode = #tpu.pipeline_mode<synchronous>, transform_indices = @transform_4, window_bounds = array<i64: 1, 32>}, {pipeline_mode = #tpu.pipeline_mode<synchronous>, transform_indices = @transform_5, window_bounds = array<i64: 32, 32>}, {pipeline_mode = #tpu.pipeline_mode<synchronous>, transform_indices = @transform_6, window_bounds = array<i64: 32, 1>}, {transform_indices = @transform_7, window_bounds = array<i64: 2, 16, 1024>}]} {
    %c0_i32 = arith.constant 0 : i32
    %0 = arith.cmpi eq, %arg0, %c0_i32 : i32
    %1 = arith.extui %0 : i1 to i32
    %c0_i32_0 = arith.constant 0 : i32
    %2 = arith.cmpi ne, %1, %c0_i32_0 : i32
    scf.if %2 {
      %cst_62 = arith.constant 0.000000e+00 : f32
      %97 = vector.broadcast %cst_62 : f32 to vector<32x1024xf32>
      %c0_63 = arith.constant 0 : index
      %c0_64 = arith.constant 0 : index
      %98 = vector.load %arg9[%c0_63, %c0_64] : memref<32x1024xf32, #tpu.memory_space<vmem>>, vector<32x1024xf32>
      tpu.vector_store %arg9[%c0_63, %c0_64], %97 {strides = array<i32>} : memref<32x1024xf32, #tpu.memory_space<vmem>>, vector<32x1024xf32>,
    } else {
    }
    %c0 = arith.constant 0 : index
    %c0_1 = arith.constant 0 : index
    %3 = vector.load %arg4[%c0, %c0_1] : memref<32x32xf32, #tpu.memory_space<vmem>>, vector<32x32xf32>
    %c0_2 = arith.constant 0 : index
    %c0_3 = arith.constant 0 : index
    %4 = vector.load %arg5[%c0_2, %c0_3] : memref<1x32xf32, #tpu.memory_space<vmem>>, vector<1x32xf32>
    %c0_4 = arith.constant 0 : index
    %c0_5 = arith.constant 0 : index
    %5 = vector.load %arg6[%c0_4, %c0_5] : memref<32x32xf32, #tpu.memory_space<vmem>>, vector<32x32xf32>
    %c0_6 = arith.constant 0 : index
    %c0_7 = arith.constant 0 : index
    %6 = vector.load %arg7[%c0_6, %c0_7] : memref<32x1xf32, #tpu.memory_space<vmem>>, vector<32x1xf32>
    %c0_8 = arith.constant 0 : index
    %c0_9 = arith.constant 0 : index
    %c0_10 = arith.constant 0 : index
    %7 = vector.load %arg1[%c0_8, %c0_9, %c0_10] : memref<2x16x32xf32, #tpu.memory_space<vmem>>, vector<1x16x32xf32>
    %8 = vector.shape_cast %7 : vector<1x16x32xf32> to vector<16x32xf32>
    %c0_11 = arith.constant 0 : index
    %c0_12 = arith.constant 0 : index
    %c0_13 = arith.constant 0 : index
    %9 = vector.load %arg2[%c0_11, %c0_12, %c0_13] : memref<2x32x256xf32, #tpu.memory_space<vmem>>, vector<1x32x256xf32>
    %10 = vector.shape_cast %9 : vector<1x32x256xf32> to vector<32x256xf32>
    %cst = arith.constant dense<0.000000e+00> : vector<16x32xf32>
    %11 = tpu.matmul %8, %3, %cst {dimension_numbers = #tpu.dot_dimension_numbers<[1], [0], [0], [1], [0, 0, 1, 1], [], []>} : vector<16x32xf32>, vector<32x32xf32>, vector<16x32xf32> -> vector<16x32xf32>
    %12 = vector.broadcast %4 : vector<1x32xf32> to vector<16x32xf32>
    %13 = arith.addf %11, %12 : vector<16x32xf32>
    %cst_14 = arith.constant 0.353553385 : f32
    %14 = vector.broadcast %cst_14 : f32 to vector<16x32xf32>
    %15 = arith.mulf %13, %14 : vector<16x32xf32>
    %cst_15 = arith.constant dense<0.000000e+00> : vector<32x256xf32>
    %16 = tpu.matmul %5, %10, %cst_15 {dimension_numbers = #tpu.dot_dimension_numbers<[1], [0], [0], [1], [0, 0, 1, 1], [], []>} : vector<32x32xf32>, vector<32x256xf32>, vector<32x256xf32> -> vector<32x256xf32>
    %17 = vector.broadcast %6 : vector<32x1xf32> to vector<32x256xf32>
    %18 = arith.addf %16, %17 : vector<32x256xf32>
    %19 = vector.extract_strided_slice %18 {offsets = [0, 0], sizes = [8, 256], strides = [1, 1]} : vector<32x256xf32> to vector<8x256xf32>
    %c0_16 = arith.constant 0 : index
    %c0_17 = arith.constant 0 : index
    %20 = vector.load %arg9[%c0_16, %c0_17] : memref<32x1024xf32, #tpu.memory_space<vmem>>, vector<8x256xf32>
    tpu.vector_store %arg9[%c0_16, %c0_17], %19 {strides = array<i32>} : memref<32x1024xf32, #tpu.memory_space<vmem>>, vector<8x256xf32>,
    %21 = vector.extract_strided_slice %18 {offsets = [8, 0], sizes = [8, 256], strides = [1, 1]} : vector<32x256xf32> to vector<8x256xf32>
    %c8 = arith.constant 8 : index
    %c256 = arith.constant 256 : index
    %22 = vector.load %arg9[%c8, %c256] : memref<32x1024xf32, #tpu.memory_space<vmem>>, vector<8x256xf32>
    tpu.vector_store %arg9[%c8, %c256], %21 {strides = array<i32>} : memref<32x1024xf32, #tpu.memory_space<vmem>>, vector<8x256xf32>,
    %23 = vector.extract_strided_slice %18 {offsets = [16, 0], sizes = [8, 256], strides = [1, 1]} : vector<32x256xf32> to vector<8x256xf32>
    %c16 = arith.constant 16 : index
    %c512 = arith.constant 512 : index
    %24 = vector.load %arg9[%c16, %c512] : memref<32x1024xf32, #tpu.memory_space<vmem>>, vector<8x256xf32>
    tpu.vector_store %arg9[%c16, %c512], %23 {strides = array<i32>} : memref<32x1024xf32, #tpu.memory_space<vmem>>, vector<8x256xf32>,
    %25 = vector.extract_strided_slice %18 {offsets = [24, 0], sizes = [8, 256], strides = [1, 1]} : vector<32x256xf32> to vector<8x256xf32>
    %c24 = arith.constant 24 : index
    %c768 = arith.constant 768 : index
    %26 = vector.load %arg9[%c24, %c768] : memref<32x1024xf32, #tpu.memory_space<vmem>>, vector<8x256xf32>
    tpu.vector_store %arg9[%c24, %c768], %25 {strides = array<i32>} : memref<32x1024xf32, #tpu.memory_space<vmem>>, vector<8x256xf32>,
    %c0_18 = arith.constant 0 : index
    %c0_19 = arith.constant 0 : index
    %27 = vector.load %arg9[%c0_18, %c0_19] : memref<32x1024xf32, #tpu.memory_space<vmem>>, vector<32x1024xf32>
    %cst_20 = arith.constant dense<0.000000e+00> : vector<16x1024xf32>
    %28 = tpu.matmul %15, %27, %cst_20 {dimension_numbers = #tpu.dot_dimension_numbers<[1], [0], [0], [1], [0, 0, 1, 1], [], []>} : vector<16x32xf32>, vector<32x1024xf32>, vector<16x1024xf32> -> vector<16x1024xf32>
    %c0_21 = arith.constant 0 : index
    %c0_22 = arith.constant 0 : index
    %c0_23 = arith.constant 0 : index
    %29 = vector.load %arg3[%c0_21, %c0_22, %c0_23] : memref<2x1x256xi32, #tpu.memory_space<vmem>>, vector<1x1x256xi32>
    %30 = vector.shape_cast %29 : vector<1x1x256xi32> to vector<1x256xi32>
    %c0_i32_24 = arith.constant 0 : i32
    %31 = vector.broadcast %c0_i32_24 : i32 to vector<1x256xi32>
    %32 = arith.cmpi ne, %30, %31 : vector<1x256xi32>
    %cst_25 = arith.constant -1.000000e+30 : f32
    %cst_26 = arith.constant 0.000000e+00 : f32
    %33 = vector.broadcast %cst_25 : f32 to vector<1x256xf32>
    %34 = vector.broadcast %cst_26 : f32 to vector<1x256xf32>
    %35 = arith.select %32, %33, %34 : vector<1x256xi1>, vector<1x256xf32>
    %36 = tpu.concatenate %35, %35, %35, %35 in 1 : vector<1x256xf32>, vector<1x256xf32>, vector<1x256xf32>, vector<1x256xf32> -> vector<1x1024xf32>
    %37 = vector.broadcast %36 : vector<1x1024xf32> to vector<16x1024xf32>
    %38 = arith.addf %28, %37 : vector<16x1024xf32>
    %cst_27 = arith.constant dense<0xFF800000> : vector<16xf32>
    %39 = vector.multi_reduction <maximumf>, %38, %cst_27 [1] : vector<16x1024xf32> to vector<16xf32>
    %40 = vector.shape_cast %39 : vector<16xf32> to vector<16x1xf32>
    %41 = vector.broadcast %40 : vector<16x1xf32> to vector<16x1024xf32>
    %42 = arith.subf %38, %41 : vector<16x1024xf32>
    %43 = math.exp %42 : vector<16x1024xf32>
    %cst_28 = arith.constant dense<0.000000e+00> : vector<16xf32>
    %44 = vector.multi_reduction <add>, %43, %cst_28 [1] : vector<16x1024xf32> to vector<16xf32>
    %45 = vector.shape_cast %44 : vector<16xf32> to vector<16x1xf32>
    %46 = tpu.reciprocal %45 {approx = true} : vector<16x1xf32> -> vector<16x1xf32>
    %47 = vector.broadcast %46 : vector<16x1xf32> to vector<16x1024xf32>
    %48 = arith.mulf %43, %47 : vector<16x1024xf32>
    %c0_29 = arith.constant 0 : index
    %c0_30 = arith.constant 0 : index
    %c0_31 = arith.constant 0 : index
    %49 = vector.load %arg8[%c0_29, %c0_30, %c0_31] : memref<2x16x1024xf32, #tpu.memory_space<vmem>>, vector<1x16x1024xf32>
    %50 = vector.shape_cast %49 : vector<1x16x1024xf32> to vector<16x1024xf32>
    %51 = vector.shape_cast %48 : vector<16x1024xf32> to vector<1x16x1024xf32>
    tpu.vector_store %arg8[%c0_29, %c0_30, %c0_31], %51 {strides = array<i32>} : memref<2x16x1024xf32, #tpu.memory_space<vmem>>, vector<1x16x1024xf32>,
    %c1 = arith.constant 1 : index
    %c0_32 = arith.constant 0 : index
    %c0_33 = arith.constant 0 : index
    %52 = vector.load %arg1[%c1, %c0_32, %c0_33] : memref<2x16x32xf32, #tpu.memory_space<vmem>>, vector<1x16x32xf32>
    %53 = vector.shape_cast %52 : vector<1x16x32xf32> to vector<16x32xf32>
    %c1_34 = arith.constant 1 : index
    %c0_35 = arith.constant 0 : index
    %c0_36 = arith.constant 0 : index
    %54 = vector.load %arg2[%c1_34, %c0_35, %c0_36] : memref<2x32x256xf32, #tpu.memory_space<vmem>>, vector<1x32x256xf32>
    %55 = vector.shape_cast %54 : vector<1x32x256xf32> to vector<32x256xf32>
    %cst_37 = arith.constant dense<0.000000e+00> : vector<16x32xf32>
    %56 = tpu.matmul %53, %3, %cst_37 {dimension_numbers = #tpu.dot_dimension_numbers<[1], [0], [0], [1], [0, 0, 1, 1], [], []>} : vector<16x32xf32>, vector<32x32xf32>, vector<16x32xf32> -> vector<16x32xf32>
    %57 = vector.broadcast %4 : vector<1x32xf32> to vector<16x32xf32>
    %58 = arith.addf %56, %57 : vector<16x32xf32>
    %cst_38 = arith.constant 0.353553385 : f32
    %59 = vector.broadcast %cst_38 : f32 to vector<16x32xf32>
    %60 = arith.mulf %58, %59 : vector<16x32xf32>
    %cst_39 = arith.constant dense<0.000000e+00> : vector<32x256xf32>
    %61 = tpu.matmul %5, %55, %cst_39 {dimension_numbers = #tpu.dot_dimension_numbers<[1], [0], [0], [1], [0, 0, 1, 1], [], []>} : vector<32x32xf32>, vector<32x256xf32>, vector<32x256xf32> -> vector<32x256xf32>
    %62 = vector.broadcast %6 : vector<32x1xf32> to vector<32x256xf32>
    %63 = arith.addf %61, %62 : vector<32x256xf32>
    %64 = vector.extract_strided_slice %63 {offsets = [0, 0], sizes = [8, 256], strides = [1, 1]} : vector<32x256xf32> to vector<8x256xf32>
    %c0_40 = arith.constant 0 : index
    %c0_41 = arith.constant 0 : index
    %65 = vector.load %arg9[%c0_40, %c0_41] : memref<32x1024xf32, #tpu.memory_space<vmem>>, vector<8x256xf32>
    tpu.vector_store %arg9[%c0_40, %c0_41], %64 {strides = array<i32>} : memref<32x1024xf32, #tpu.memory_space<vmem>>, vector<8x256xf32>,
    %66 = vector.extract_strided_slice %63 {offsets = [8, 0], sizes = [8, 256], strides = [1, 1]} : vector<32x256xf32> to vector<8x256xf32>
    %c8_42 = arith.constant 8 : index
    %c256_43 = arith.constant 256 : index
    %67 = vector.load %arg9[%c8_42, %c256_43] : memref<32x1024xf32, #tpu.memory_space<vmem>>, vector<8x256xf32>
    tpu.vector_store %arg9[%c8_42, %c256_43], %66 {strides = array<i32>} : memref<32x1024xf32, #tpu.memory_space<vmem>>, vector<8x256xf32>,
    %68 = vector.extract_strided_slice %63 {offsets = [16, 0], sizes = [8, 256], strides = [1, 1]} : vector<32x256xf32> to vector<8x256xf32>
    %c16_44 = arith.constant 16 : index
    %c512_45 = arith.constant 512 : index
    %69 = vector.load %arg9[%c16_44, %c512_45] : memref<32x1024xf32, #tpu.memory_space<vmem>>, vector<8x256xf32>
    tpu.vector_store %arg9[%c16_44, %c512_45], %68 {strides = array<i32>} : memref<32x1024xf32, #tpu.memory_space<vmem>>, vector<8x256xf32>,
    %70 = vector.extract_strided_slice %63 {offsets = [24, 0], sizes = [8, 256], strides = [1, 1]} : vector<32x256xf32> to vector<8x256xf32>
    %c24_46 = arith.constant 24 : index
    %c768_47 = arith.constant 768 : index
    %71 = vector.load %arg9[%c24_46, %c768_47] : memref<32x1024xf32, #tpu.memory_space<vmem>>, vector<8x256xf32>
    tpu.vector_store %arg9[%c24_46, %c768_47], %70 {strides = array<i32>} : memref<32x1024xf32, #tpu.memory_space<vmem>>, vector<8x256xf32>,
    %c0_48 = arith.constant 0 : index
    %c0_49 = arith.constant 0 : index
    %72 = vector.load %arg9[%c0_48, %c0_49] : memref<32x1024xf32, #tpu.memory_space<vmem>>, vector<32x1024xf32>
    %cst_50 = arith.constant dense<0.000000e+00> : vector<16x1024xf32>
    %73 = tpu.matmul %60, %72, %cst_50 {dimension_numbers = #tpu.dot_dimension_numbers<[1], [0], [0], [1], [0, 0, 1, 1], [], []>} : vector<16x32xf32>, vector<32x1024xf32>, vector<16x1024xf32> -> vector<16x1024xf32>
    %c1_51 = arith.constant 1 : index
    %c0_52 = arith.constant 0 : index
    %c0_53 = arith.constant 0 : index
    %74 = vector.load %arg3[%c1_51, %c0_52, %c0_53] : memref<2x1x256xi32, #tpu.memory_space<vmem>>, vector<1x1x256xi32>
    %75 = vector.shape_cast %74 : vector<1x1x256xi32> to vector<1x256xi32>
    %c0_i32_54 = arith.constant 0 : i32
    %76 = vector.broadcast %c0_i32_54 : i32 to vector<1x256xi32>
    %77 = arith.cmpi ne, %75, %76 : vector<1x256xi32>
    %cst_55 = arith.constant -1.000000e+30 : f32
    %cst_56 = arith.constant 0.000000e+00 : f32
    %78 = vector.broadcast %cst_55 : f32 to vector<1x256xf32>
    %79 = vector.broadcast %cst_56 : f32 to vector<1x256xf32>
    %80 = arith.select %77, %78, %79 : vector<1x256xi1>, vector<1x256xf32>
    %81 = tpu.concatenate %80, %80, %80, %80 in 1 : vector<1x256xf32>, vector<1x256xf32>, vector<1x256xf32>, vector<1x256xf32> -> vector<1x1024xf32>
    %82 = vector.broadcast %81 : vector<1x1024xf32> to vector<16x1024xf32>
    %83 = arith.addf %73, %82 : vector<16x1024xf32>
    %cst_57 = arith.constant dense<0xFF800000> : vector<16xf32>
    %84 = vector.multi_reduction <maximumf>, %83, %cst_57 [1] : vector<16x1024xf32> to vector<16xf32>
    %85 = vector.shape_cast %84 : vector<16xf32> to vector<16x1xf32>
    %86 = vector.broadcast %85 : vector<16x1xf32> to vector<16x1024xf32>
    %87 = arith.subf %83, %86 : vector<16x1024xf32>
    %88 = math.exp %87 : vector<16x1024xf32>
    %cst_58 = arith.constant dense<0.000000e+00> : vector<16xf32>
    %89 = vector.multi_reduction <add>, %88, %cst_58 [1] : vector<16x1024xf32> to vector<16xf32>
    %90 = vector.shape_cast %89 : vector<16xf32> to vector<16x1xf32>
    %91 = tpu.reciprocal %90 {approx = true} : vector<16x1xf32> -> vector<16x1xf32>
    %92 = vector.broadcast %91 : vector<16x1xf32> to vector<16x1024xf32>
    %93 = arith.mulf %88, %92 : vector<16x1024xf32>
    %c1_59 = arith.constant 1 : index
    %c0_60 = arith.constant 0 : index
    %c0_61 = arith.constant 0 : index
    %94 = vector.load %arg8[%c1_59, %c0_60, %c0_61] : memref<2x16x1024xf32, #tpu.memory_space<vmem>>, vector<1x16x1024xf32>
    %95 = vector.shape_cast %94 : vector<1x16x1024xf32> to vector<16x1024xf32>
    %96 = vector.shape_cast %93 : vector<16x1024xf32> to vector<1x16x1024xf32>
    tpu.vector_store %arg8[%c1_59, %c0_60, %c0_61], %96 {strides = array<i32>} : memref<2x16x1024xf32, #tpu.memory_space<vmem>>, vector<1x16x1024xf32>,
    return
  }
  func.func @transform_0(%arg0: i32) -> (i32, i32, i32) {
    %c0_i32 = arith.constant 0 : i32
    %c0_i32_0 = arith.constant 0 : i32
    %c0_i32_1 = arith.constant 0 : i32
    return %arg0, %c0_i32, %c0_i32_0 : i32, i32, i32
  }
  func.func @transform_1(%arg0: i32) -> (i32, i32, i32) {
    %c0_i32 = arith.constant 0 : i32
    %c0_i32_0 = arith.constant 0 : i32
    %c0_i32_1 = arith.constant 0 : i32
    return %arg0, %c0_i32, %c0_i32_0 : i32, i32, i32
  }
  func.func @transform_2(%arg0: i32) -> (i32, i32, i32) {
    %c0_i32 = arith.constant 0 : i32
    %c0_i32_0 = arith.constant 0 : i32
    %c0_i32_1 = arith.constant 0 : i32
    return %arg0, %c0_i32, %c0_i32_0 : i32, i32, i32
  }
  func.func @transform_3(%arg0: i32) -> (i32, i32) {
    %c0_i32 = arith.constant 0 : i32
    %c0_i32_0 = arith.constant 0 : i32
    %c0_i32_1 = arith.constant 0 : i32
    return %c0_i32, %c0_i32_0 : i32, i32
  }
  func.func @transform_4(%arg0: i32) -> (i32, i32) {
    %c0_i32 = arith.constant 0 : i32
    %c0_i32_0 = arith.constant 0 : i32
    %c0_i32_1 = arith.constant 0 : i32
    return %c0_i32, %c0_i32_0 : i32, i32
  }
  func.func @transform_5(%arg0: i32) -> (i32, i32) {
    %c0_i32 = arith.constant 0 : i32
    %c0_i32_0 = arith.constant 0 : i32
    %c0_i32_1 = arith.constant 0 : i32
    return %c0_i32, %c0_i32_0 : i32, i32
  }
  func.func @transform_6(%arg0: i32) -> (i32, i32) {
    %c0_i32 = arith.constant 0 : i32
    %c0_i32_0 = arith.constant 0 : i32
    %c0_i32_1 = arith.constant 0 : i32
    return %c0_i32, %c0_i32_0 : i32, i32
  }
  func.func @transform_7(%arg0: i32) -> (i32, i32, i32) {
    %c0_i32 = arith.constant 0 : i32
    %c0_i32_0 = arith.constant 0 : i32
    %c0_i32_1 = arith.constant 0 : i32
    return %arg0, %c0_i32, %c0_i32_0 : i32, i32, i32
  }
}

</mosaic_0001>

<bundles_post_ra>
// kernel: mh_attention_map.1
= control target key start
LH: loop header
LB: loop body
LE: loop exit
PB: predicated region body
PF: predicated region fallthrough
CT: control target
= control target key end

     0   :  { %v1697_v3 = vmov 0.0   ;;  %v1698_v4 = vmov 0   ;;  %vm91_vm0 = vcmask 261120   ;;  %v1699_v30 = vmov 0.0|0.0   ;;  %s2301_s3 = inlined_call_operand.vmem [shape: f32[32,32], index: 3, kind: input, shape index: {}]   ;;  %s2302_s1 = inlined_call_operand.vmem [shape: f32[2,32,256], index: 1, kind: input, shape index: {}]   ;;  %s2303_s0 = inlined_call_operand.vmem [shape: f32[2,16,32], index: 0, kind: input, shape index: {}]   ;;  %s2304_s6 = inlined_call_operand.vmem [shape: f32[32,1], index: 6, kind: input, shape index: {}]   ;;  %s2305_s5 = inlined_call_operand.vmem [shape: f32[32,32], index: 5, kind: input, shape index: {}]   ;;  %s2306_s4 = inlined_call_operand.vmem [shape: f32[1,32], index: 4, kind: input, shape index: {}]   ;;  %s2307_s2 = inlined_call_operand.vmem [shape: s32[2,1,256], index: 2, kind: input, shape index: {}]   ;;  %s2308_s7 = inlined_call_operand.vmem [shape: f32[2,16,1024], index: 7, kind: output, shape index: {}]  }
   0x1   :  { %v62_v0 = vld [vmem:[%s2301_s3] sm:$0xff]  ;;  %v63_v1 = vld [vmem:[%s2301_s3 + $0x8] sm:$0xff]  ;;  %271 = vmatprep.mubr.f32.mxu1 %v1697_v3  ;;  %1623 = vset.pattern.permute.xlu0 %v1698_v4  ;;  %v80_v6 = vld [vmem:[%s2302_s1 + $0x18] sm:$0xff] }
   0x2   :  { %v78_v2 = vld [vmem:[%s2302_s1 + $0x8] sm:$0xff]  ;;  %v1750_v5 = vpack.c.bf16 %v63_v1, %v62_v0  ;;  %v77_v7 = vld [vmem:[%s2302_s1] sm:$0xff]  ;;  %v79_v8 = vld [vmem:[%s2302_s1 + $0x10] sm:$0xff]  ;;  %1624 = vset.pattern.permute.xlu1 %v1698_v4 }
   0x3   :  { %v1572_v9 = vpack.c.bf16 %v80_v6, %v78_v2  ;;  %v1574_v10 = vpack.c.bf16 %v79_v8, %v77_v7  ;;  %v64_v11 = vld [vmem:[%s2301_s3 + $0x10] sm:$0xff]  ;;  %v65_v12 = vld [vmem:[%s2301_s3 + $0x18] sm:$0xff]  ;;  %v82_v13 = vld [vmem:[%s2302_s1 + $0x28] sm:$0xff] }
   0x4   :  { %1565 = vmatprep.subr.bf16.mxu0 %v1750_v5  ;;  %v1771_v14 = vpack.c.bf16 %v65_v12, %v64_v11  ;;  %v84_v15 = vld [vmem:[%s2302_s1 + $0x38] sm:$0xff]  ;;  %v81_v16 = vld [vmem:[%s2302_s1 + $0x20] sm:$0xff]  ;;  %v83_v17 = vld [vmem:[%s2302_s1 + $0x30] sm:$0xff] }
   0x5   :  { %1573 = vmatprep.subr.bf16.mxu1 %v1572_v9  ;;  %1567 = vmatpush3.bf16.msra.mxu0 %v1750_v5  ;;  %v1576_v18 = vpack.c.bf16 %v84_v15, %v82_v13  ;;  %v75_v19 = vld [vmem:[%s2303_s0] sm:$0xff]  ;;  %v1578_v20 = vpack.c.bf16 %v83_v17, %v81_v16  ;;  %v74_v22 = vld [vmem:[%s2304_s6 + $0x18] sm:$0xff]  ;;  %v76_v23 = vld [vmem:[%s2303_s0 + $0x8] sm:$0xff]  ;;  %v340_v13 = vlaneseq }
   0x6   :  { %1575 = vmatpush1.bf16.msra.mxu1 %v1574_v10  ;;  %1569 = vmatprep.subr.bf16.mxu0 %v1771_v14  ;;  %v71_v21 = vld [vmem:[%s2304_s6] sm:$0xff]  ;;  %v72_v24 = vld [vmem:[%s2304_s6 + $0x8] sm:$0xff]  ;;  %v73_v26 = vld [vmem:[%s2304_s6 + $0x10] sm:$0xff] }
   0x7   :  { %1577 = vmatprep.subr.bf16.mxu1 %v1576_v18  ;;  %1550 = vmatprep.mubr.msk.f32.mxu0 %vm91_vm0, %v75_v19  ;;  %v1804_v25 = vld [vmem:[%s2305_s5] sm:$0xff]  ;;  %v1816_v27 = vld [vmem:[%s2305_s5 + $0x8] sm:$0xff]  ;;  %v1825_v28 = vld [vmem:[%s2305_s5 + $0x10] sm:$0xff]  ;;  %v1938_v15 = vshrl.u32 %v340_v13, 7 }
   0x8   :  { %177 = vperm.xlu0 %1623, %v71_v21   ;;  %192 = vperm.xlu1 %1624, %v74_v22   ;;  %v1833_v29 = vld [vmem:[%s2305_s5 + $0x18] sm:$0xff]  ;;  %v1845_v32 = vld [vmem:[%s2306_s4] ss:$0 sm:$0xff]  ;;  %v1492_v60 = vld [vmem:[%s2302_s1 + $0x48] sm:$0xff] }
   0x9   :  { %1571 = vmatpush3.bf16.msra.mxu0 %v1771_v14  ;;  %v1494_v61 = vld [vmem:[%s2302_s1 + $0x58] sm:$0xff]  ;;  %v1491_v0 = vld [vmem:[%s2302_s1 + $0x40] sm:$0xff]  ;;  %v1493_v1 = vld [vmem:[%s2302_s1 + $0x50] sm:$0xff]  ;;  %v1941_v16 = vsub.s32 0, %v1938_v15  ;;  %v346_v19 = vsub.s32 1, %v1938_v15 }
   0xa   :  { %1579 = vmatpush1.bf16.msra.mxu1 %v1578_v20  ;;  %v1600_v63 = vpack.c.bf16 %v1494_v61, %v1492_v60  ;;  %v1496_v4 = vld [vmem:[%s2302_s1 + $0x68] sm:$0xff]  ;;  %v1489_v6 = vld [vmem:[%s2303_s0 + $0x10] sm:$0xff]  ;;  %v1602_v7 = vpack.c.bf16 %v1493_v1, %v1491_v0  ;;  %v1495_v9 = vld [vmem:[%s2302_s1 + $0x60] sm:$0xff] }
   0xb   :  { %1584 = vmatprep.subr.bf16.mxu1 %v1699_v30  ;;  %v1497_v10 = vld [vmem:[%s2302_s1 + $0x70] sm:$0xff]  ;;  %v1490_v11 = vld [vmem:[%s2303_s0 + $0x18] sm:$0xff] }
   0xc   :  { %1551 = vmatmul.mubr.msk.f32.vlgmr.msra.gmra.mrb[0].mxu0 %vm91_vm0, %v76_v23  ;;  %182 = vperm.xlu0 %1623, %v72_v24   ;;  %v1606_v12 = vpack.c.bf16 %v1497_v10, %v1495_v9 }
   0xd   :  { %1477 = vmatmul.mubr.msk.f32.vlgmr.msra.gmra.mrb[0].mxu1 %vm91_vm0, %v1804_v25  ;;  %187 = vperm.xlu1 %1624, %v73_v26  }
   0xe   :  { %277 = vmatprep.mubr.f32.mxu1 %v1697_v3  ;;  %428 = vmatprep.mubr.f32.mxu0 %v1697_v3 }
   0xf   :  { %1585 = vmatpush1.bf16.msra.mxu1 %v1699_v30 }
  0x11   :  { %1478 = vmatmul.mubr.msk.f32.gmra.mrb[2].mxu1 %vm91_vm0, %v1816_v27 }
  0x12   :  { %283 = vmatprep.mubr.f32.mxu1 %v1697_v3 }
  0x15   :  { %1479 = vmatmul.mubr.msk.f32.gmra.mrb[4].mxu1 %vm91_vm0, %v1825_v28 }
  0x16   :  { %289 = vmatprep.mubr.f32.mxu1 %v1697_v3 }
  0x19   :  { %1480 = vmatmul.mubr.msk.f32.gmra.mrb[6].mxu1 %vm91_vm0, %v1833_v29 }
  0x1a   :  { %582 = vmatprep.mubr.f32.mxu1 %v1697_v3 }
  0x87   :  { %v1840_v31 = vpop.permute.xlu0 %177  ;;  %v1848_v38 = vpop.permute.xlu1 %192 }
  0x8b   :  { %v1853_v43 = vpop.permute.xlu0 %182 }
  0x8c   :  { %v1858_v48 = vpop.permute.xlu1 %187 }
  0xdf   :  { %v1552_v33 = vpop.f32.mrb[0].mxu0 }
  0xe0   :  { %v273_v34 = vpop.f32.mrb[0].mxu1  ;;  %v164_v35 = vpop.f32.mrb[1].mxu0  ;;  %v170_v42 = vadd.f32 %v1552_v33, %v1845_v32 }
  0xe1   :  { %v165_v36 = vadd.f32 %v1845_v32, %v164_v35  ;;  %v275_v37 = vpop.f32.mrb[1].mxu1  ;;  %v274_v40 = vadd.f32 %v273_v34, %v1840_v31 }
  0xe2   :  { %v276_v39 = vadd.f32 %v275_v37, %v1840_v31  ;;  %v174_v49 = vmul.f32 0.35355338, %v170_v42 }
  0xe3   :  { %v173_v41 = vmul.f32 0.35355338, %v165_v36 }
  0xe4   :  { %v279_v44 = vpop.f32.mrb[2].mxu1  ;;  %364 = vmatprep.subr.mxu0 %v276_v39 }
  0xe5   :  { %v280_v45 = vadd.f32 %v279_v44, %v1853_v43  ;;  %v281_v46 = vpop.f32.mrb[3].mxu1  ;;  %365 = vmatpush1.msra.mxu0 %v274_v40 }
  0xe6   :  { %v282_v47 = vadd.f32 %v281_v46, %v1853_v43  ;;  %1481 = vmatmul.mubr.msk.f32.vlgmr.msra.gmra.mrb[2].mxu0 %vm91_vm0, %v173_v41 }
  0xe7   :  { %434 = vmatprep.mubr.f32.mxu0 %v1697_v3  ;;  %v1582_v52 = vpack.c.bf16 %v280_v45, %v1697_v3 }
  0xe8   :  { %v1580_v50 = vpack.c.bf16 %v282_v47, %v1697_v3  ;;  %v285_v51 = vpop.f32.mrb[4].mxu1 }
  0xe9   :  { %v287_v53 = vpop.f32.mrb[5].mxu1  ;;  %v286_v55 = vadd.f32 %v285_v51, %v1858_v48 }
  0xea   :  { %v288_v54 = vadd.f32 %v287_v53, %v1858_v48  ;;  %1482 = vmatmul.mubr.msk.f32.gmra.mrb[4].mxu0 %vm91_vm0, %v174_v49  ;;  %1581 = vmatprep.subr.bf16.mxu0 %v1580_v50 }
  0xeb   :  { %1583 = vmatpush1.bf16.msra.mxu0 %v1582_v52  ;;  %505 = vmatprep.mubr.f32.mxu0 %v1697_v3 }
  0xec   :  { %v291_v56 = vpop.f32.mrb[6].mxu1  ;;  %522 = vmatprep.subr.mxu1 %v288_v54  ;;  %1586 = vmatprep.subr.bf16.mxu0 %v1699_v30 }
  0xed   :  { %v293_v57 = vpop.f32.mrb[7].mxu1  ;;  %523 = vmatpush1.msra.mxu1 %v286_v55  ;;  %v292_v58 = vadd.f32 %v291_v56, %v1848_v38 }
  0xee   :  { %v294_v59 = vadd.f32 %v293_v57, %v1848_v38  ;;  %1483 = vmatmul.mubr.msk.f32.vlgmr.msra.gmra.mrb[6].mxu0 %vm91_vm0, %v173_v41  ;;  %1485 = vmatmul.mubr.msk.f32.vlgmr.msra.gmra.mrb[8].mxu1 %vm91_vm0, %v173_v41 }
  0xef   :  { %1587 = vmatpush1.bf16.msra.mxu0 %v1699_v30  ;;  %511 = vmatprep.mubr.f32.mxu0 %v1697_v3  ;;  %v1590_v2 = vpack.c.bf16 %v292_v58, %v1697_v3 }
  0xf0   :  { %v1588_v62 = vpack.c.bf16 %v294_v59, %v1697_v3  ;;  %588 = vmatprep.mubr.f32.mxu1 %v1697_v3  ;;  %1593 = vmatprep.subr.bf16.mxu1 %v1750_v5 }
  0xf1   :  { %1595 = vmatpush3.bf16.msra.mxu1 %v1750_v5  ;;  %v1498_v5 = vld [vmem:[%s2302_s1 + $0x78] sm:$0xff] }
  0xf2   :  { %1484 = vmatmul.mubr.msk.f32.gmra.mrb[8].mxu0 %vm91_vm0, %v174_v49  ;;  %1486 = vmatmul.mubr.msk.f32.gmra.mrb[10].mxu1 %vm91_vm0, %v174_v49  ;;  %v1604_v8 = vpack.c.bf16 %v1498_v5, %v1496_v4 }
  0xf3   :  { %1589 = vmatprep.subr.bf16.mxu0 %v1588_v62  ;;  %659 = vmatprep.mubr.f32.mxu0 %v1697_v3 }
  0xf4   :  { %1591 = vmatpush1.bf16.msra.mxu0 %v1590_v2  ;;  %1597 = vmatprep.subr.bf16.mxu1 %v1771_v14 }
  0xf5   :  { %1601 = vmatprep.subr.bf16.mxu0 %v1600_v63  ;;  %1599 = vmatpush3.bf16.msra.mxu1 %v1771_v14  ;;  %v336_v14 = vld [vmem:[%s2307_s2] sm:$0x3] }
  0xf6   :  { %1561 = vmatprep.mubr.msk.f32.mxu1 %vm91_vm0, %v1489_v6  ;;  %vm337_vm1 = vcmp.ne.s32.totalorder %v336_v14, 0 }
  0xf7   :  { %1487 = vmatmul.mubr.msk.f32.vlgmr.msra.gmra.mrb[10].mxu0 %vm91_vm0, %v173_v41  ;;  %v338_v18 = vsel %vm337_vm1, -1e+30, %v1697_v3 }
  0xf8   :  { %1603 = vmatpush1.bf16.msra.mxu0 %v1602_v7  ;;  %665 = vmatprep.mubr.f32.mxu0 %v1697_v3  ;;  %v343_v21 = vrot.slane %v338_v18, %v1941_v16  ;;  %v347_v23 = vrot.slane %v338_v18, %v346_v19 }
  0xf9   :  { %1605 = vmatprep.subr.bf16.mxu0 %v1604_v8  ;;  %1562 = vmatmul.mubr.msk.f32.vlgmr.msra.gmra.mrb[12].mxu1 %vm91_vm0, %v1490_v11 }
  0xfa   :  { %1107 = vmatprep.mubr.f32.mxu1 %v1697_v3 }
  0xfb   :  { %1488 = vmatmul.mubr.msk.f32.gmra.mrb[12].mxu0 %vm91_vm0, %v174_v49 }
  0xfc   :  { %1607 = vmatpush1.bf16.msra.mxu0 %v1606_v12  ;;  %949 = vmatprep.mubr.f32.mxu0 %v1697_v3 }
  0xfd   :  { %1612 = vmatprep.subr.bf16.mxu0 %v1699_v30 }
  0xff   :  { %1501 = vmatmul.mubr.msk.f32.vlgmr.msra.gmra.mrb[14].mxu0 %vm91_vm0, %v1804_v25  ;;  %v353_v25 = vrot.slane %v343_v21, %v1941_v16 }
 0x100   :  { %955 = vmatprep.mubr.f32.mxu0 %v1697_v3  ;;  %1613 = vmatpush1.bf16.msra.mxu0 %v1699_v30 }
 0x103   :  { %1502 = vmatmul.mubr.msk.f32.gmra.mrb[16].mxu0 %vm91_vm0, %v1816_v27 }
 0x104   :  { %961 = vmatprep.mubr.f32.mxu0 %v1697_v3 }
 0x107   :  { %1503 = vmatmul.mubr.msk.f32.gmra.mrb[18].mxu0 %vm91_vm0, %v1825_v28  ;;  %v357_v28 = vrot.slane %v347_v23, %v1941_v16 }
 0x108   :  { %967 = vmatprep.mubr.f32.mxu0 %v1697_v3 }
 0x10b   :  { %1504 = vmatmul.mubr.msk.f32.gmra.mrb[20].mxu0 %vm91_vm0, %v1833_v29 }
 0x10c   :  { %1261 = vmatprep.mubr.f32.mxu0 %v1697_v3 }
 0x1b9   :  { %v430_v17 = vpop.f32.mrb[2].mxu0 }
 0x1ba   :  { %v432_v20 = vpop.f32.mrb[3].mxu0  ;;  %v1954_v36 = vadd.f32 %v430_v17, %v353_v25 }
 0x1bb   :  { %v1956_v40 = vadd.f32 %v432_v20, %v357_v28 }
 0x1bd   :  { %v436_v22 = vpop.f32.mrb[4].mxu0 }
 0x1be   :  { %v438_v24 = vpop.f32.mrb[5].mxu0  ;;  %v1966_v49 = vadd.f32 %v436_v22, %v353_v25 }
 0x1bf   :  { %v1970_v51 = vadd.f32 %v438_v24, %v357_v28 }
 0x1c1   :  { %v507_v26 = vpop.f32.mrb[6].mxu0  ;;  %v584_v27 = vpop.f32.mrb[8].mxu1 }
 0x1c2   :  { %v509_v29 = vpop.f32.mrb[7].mxu0  ;;  %v586_v33 = vpop.f32.mrb[9].mxu1  ;;  %v1950_v34 = vadd.f32 %v507_v26, %v353_v25  ;;  %v1968_v50 = vadd.f32 %v584_v27, %v353_v25 }
 0x1c3   :  { %v1952_v35 = vadd.f32 %v509_v29, %v357_v28  ;;  %v1972_v52 = vadd.f32 %v586_v33, %v357_v28 }
 0x1c4   :  { %v672_v44 = vmax.f32 %v1954_v36, %v1950_v34 }
 0x1c5   :  { %v513_v37 = vpop.f32.mrb[8].mxu0  ;;  %v590_v39 = vpop.f32.mrb[10].mxu1  ;;  %v673_v46 = vmax.f32 %v1956_v40, %v1952_v35 }
 0x1c6   :  { %v515_v41 = vpop.f32.mrb[9].mxu0  ;;  %v592_v42 = vpop.f32.mrb[11].mxu1  ;;  %v1960_v45 = vadd.f32 %v513_v37, %v353_v25  ;;  %v674_v54 = vmax.f32 %v672_v44, %v1968_v50  ;;  %v1984_v62 = vadd.f32 %v590_v39, %v353_v25 }
 0x1c7   :  { %v1964_v47 = vadd.f32 %v515_v41, %v357_v28  ;;  %v675_v58 = vmax.f32 %v673_v46, %v1972_v52  ;;  %v1987_v1 = vadd.f32 %v592_v42, %v357_v28 }
 0x1c8   :  { %v681_v55 = vmax.f32 %v1966_v49, %v1960_v45 }
 0x1c9   :  { %v682_v59 = vmax.f32 %v1970_v51, %v1964_v47 }
 0x1ca   :  { %v661_v53 = vpop.f32.mrb[10].mxu0  ;;  %v683_v5 = vmax.f32 %v681_v55, %v1984_v62 }
 0x1cb   :  { %v1977_v56 = vadd.f32 %v661_v53, %v353_v25  ;;  %v663_v57 = vpop.f32.mrb[11].mxu0  ;;  %v684_v8 = vmax.f32 %v682_v59, %v1987_v1 }
 0x1cc   :  { %v1982_v60 = vadd.f32 %v663_v57, %v357_v28  ;;  %v1563_v61 = vpop.f32.mrb[12].mxu1 }
 0x1cd   :  { %v676_v63 = vmax.f32 %v674_v54, %v1977_v56  ;;  %v874_v0 = vpop.f32.mrb[13].mxu1  ;;  %v880_v23 = vadd.f32 %v1563_v61, %v1845_v32 }
 0x1ce   :  { %v677_v2 = vmax.f32 %v675_v58, %v1982_v60  ;;  %v667_v4 = vpop.f32.mrb[12].mxu0  ;;  %v875_v11 = vadd.f32 %v1845_v32, %v874_v0 }
 0x1cf   :  { %v1991_v6 = vadd.f32 %v667_v4, %v353_v25  ;;  %v669_v7 = vpop.f32.mrb[13].mxu0 }
 0x1d0   :  { %v1994_v9 = vadd.f32 %v669_v7, %v357_v28  ;;  %v678_v10 = vmax.f32 %v676_v63, %v677_v2  ;;  %v883_v18 = vmul.f32 0.35355338, %v875_v11  ;;  %v884_v28 = vmul.f32 0.35355338, %v880_v23 }
 0x1d1   :  { %v685_v12 = vmax.f32 %v683_v5, %v1991_v6 }
 0x1d2   :  { %v686_v13 = vmax.f32 %v684_v8, %v1994_v9  ;;  %v951_v14 = vpop.f32.mrb[14].mxu0  ;;  %679 = vmax.xlane.f32.xlu0 %v678_v10 }
 0x1d3   :  { %v953_v17 = vpop.f32.mrb[15].mxu0  ;;  %v952_v22 = vadd.f32 %v951_v14, %v1840_v31 }
 0x1d4   :  { %v954_v20 = vadd.f32 %v953_v17, %v1840_v31  ;;  %v687_v21 = vmax.f32 %v685_v12, %v686_v13 }
 0x1d6   :  { %v957_v24 = vpop.f32.mrb[16].mxu0  ;;  %1043 = vmatprep.subr.mxu1 %v954_v20  ;;  %688 = vmax.xlane.f32.xlu1 %v687_v21 }
 0x1d7   :  { %v958_v25 = vadd.f32 %v957_v24, %v1853_v43  ;;  %v959_v26 = vpop.f32.mrb[17].mxu0  ;;  %1044 = vmatpush1.msra.mxu1 %v952_v22 }
 0x1d8   :  { %v960_v27 = vadd.f32 %v959_v26, %v1853_v43  ;;  %1506 = vmatmul.mubr.msk.f32.vlgmr.msra.gmra.mrb[14].mxu1 %vm91_vm0, %v883_v18 }
 0x1d9   :  { %1113 = vmatprep.mubr.f32.mxu1 %v1697_v3  ;;  %v1610_v31 = vpack.c.bf16 %v958_v25, %v1697_v3 }
 0x1da   :  { %v1608_v29 = vpack.c.bf16 %v960_v27, %v1697_v3  ;;  %v963_v33 = vpop.f32.mrb[18].mxu0  ;;  %v1505_v27 = vld [vmem:[%s2307_s2 + $0x2] sm:$0x3] }
 0x1db   :  { %v965_v32 = vpop.f32.mrb[19].mxu0  ;;  %v964_v39 = vadd.f32 %v963_v33, %v1858_v48  ;;  %vm1016_vm2 = vcmp.ne.s32.totalorder %v1505_v27, 0 }
 0x1dc   :  { %v966_v37 = vadd.f32 %v965_v32, %v1858_v48  ;;  %1507 = vmatmul.mubr.msk.f32.gmra.mrb[16].mxu1 %vm91_vm0, %v884_v28  ;;  %1609 = vmatprep.subr.bf16.mxu1 %v1608_v29 }
 0x1dd   :  { %1611 = vmatpush1.bf16.msra.mxu1 %v1610_v31  ;;  %1184 = vmatprep.mubr.f32.mxu1 %v1697_v3 }
 0x1de   :  { %v969_v43 = vpop.f32.mrb[20].mxu0  ;;  %1201 = vmatprep.subr.mxu0 %v966_v37  ;;  %1614 = vmatprep.subr.bf16.mxu1 %v1699_v30 }
 0x1df   :  { %v971_v41 = vpop.f32.mrb[21].mxu0  ;;  %1202 = vmatpush1.msra.mxu0 %v964_v39  ;;  %v970_v42 = vadd.f32 %v969_v43, %v1848_v38 }
 0x1e0   :  { %v972_v44 = vadd.f32 %v971_v41, %v1848_v38  ;;  %1508 = vmatmul.mubr.msk.f32.vlgmr.msra.gmra.mrb[18].mxu1 %vm91_vm0, %v883_v18  ;;  %1510 = vmatmul.mubr.msk.f32.vlgmr.msra.gmra.mrb[22].mxu0 %vm91_vm0, %v883_v18 }
 0x1e1   :  { %1615 = vmatpush1.bf16.msra.mxu1 %v1699_v30  ;;  %1190 = vmatprep.mubr.f32.mxu1 %v1697_v3  ;;  %v1618_v46 = vpack.c.bf16 %v970_v42, %v1697_v3 }
 0x1e2   :  { %v1616_v48 = vpack.c.bf16 %v972_v44, %v1697_v3  ;;  %1267 = vmatprep.mubr.f32.mxu0 %v1697_v3 }
 0x1e4   :  { %1509 = vmatmul.mubr.msk.f32.gmra.mrb[20].mxu1 %vm91_vm0, %v884_v28  ;;  %1511 = vmatmul.mubr.msk.f32.gmra.mrb[24].mxu0 %vm91_vm0, %v884_v28 }
 0x1e5   :  { %1617 = vmatprep.subr.bf16.mxu1 %v1616_v48  ;;  %1338 = vmatprep.mubr.f32.mxu1 %v1697_v3 }
 0x1e6   :  { %1619 = vmatpush1.bf16.msra.mxu1 %v1618_v46 }
 0x1e9   :  { %1512 = vmatmul.mubr.msk.f32.vlgmr.msra.gmra.mrb[22].mxu1 %vm91_vm0, %v883_v18 }
 0x1ea   :  { %1344 = vmatprep.mubr.f32.mxu1 %v1697_v3 }
 0x1ed   :  { %1513 = vmatmul.mubr.msk.f32.gmra.mrb[24].mxu1 %vm91_vm0, %v884_v28 }
 0x25f   :  { %v680_v30 = vpop.xlane.xlu0 %679 }
 0x260   :  { %v690_v38 = vsub.f32 %v1954_v36, %v680_v30  ;;  %v691_v53 = vsub.f32 %v1956_v40, %v680_v30  ;;  %v692_v54 = vsub.f32 %v1950_v34, %v680_v30  ;;  %v693_v55 = vsub.f32 %v1952_v35, %v680_v30 }
 0x261   :  { %v694_v61 = vsub.f32 %v1968_v50, %v680_v30  ;;  %v695_v0 = vsub.f32 %v1972_v52, %v680_v30  ;;  %v696_v2 = vsub.f32 %v1977_v56, %v680_v30  ;;  %v697_v40 = vsub.f32 %v1982_v60, %v680_v30 }
 0x262   :  { %v706_v57 = vmul.f32 1.442695, %v690_v38  ;;  %v708_v58 = vmul.f32 1.442695, %v691_v53  ;;  %v710_v59 = vmul.f32 1.442695, %v692_v54 }
 0x263   :  { %v712_v63 = vmul.f32 1.442695, %v693_v55  ;;  %v714_v36 = vmul.f32 1.442695, %v694_v61  ;;  %v716_v34 = vmul.f32 1.442695, %v695_v0  ;;  %v689_v21 = vpop.xlane.xlu1 %688 }
 0x264   :  { %1625 = vpow2.f32 %v706_v57  ;;  %v718_v35 = vmul.f32 1.442695, %v696_v2  ;;  %v720_v4 = vmul.f32 1.442695, %v697_v40  ;;  %v698_v22 = vsub.f32 %v1966_v49, %v689_v21 }
 0x265   :  { %1627 = vpow2.f32 %v708_v58  ;;  %v699_v23 = vsub.f32 %v1970_v51, %v689_v21  ;;  %v700_v26 = vsub.f32 %v1960_v45, %v689_v21  ;;  %v701_v28 = vsub.f32 %v1964_v47, %v689_v21 }
 0x266   :  { %1629 = vpow2.f32 %v710_v59  ;;  %v722_v24 = vmul.f32 1.442695, %v698_v22  ;;  %v702_v49 = vsub.f32 %v1984_v62, %v689_v21  ;;  %v1017_v51 = vsel %vm1016_vm2, -1e+30, %v1697_v3 }
 0x267   :  { %1631 = vpow2.f32 %v712_v63  ;;  %v724_v25 = vmul.f32 1.442695, %v699_v23  ;;  %v726_v29 = vmul.f32 1.442695, %v700_v26  ;;  %v728_v33 = vmul.f32 1.442695, %v701_v28 }
 0x268   :  { %1633 = vpow2.f32 %v714_v36  ;;  %v1022_v39 = vrot.slane %v1017_v51, %v1941_v16  ;;  %v703_v41 = vsub.f32 %v1987_v1, %v689_v21  ;;  %v730_v47 = vmul.f32 1.442695, %v702_v49 }
 0x269   :  { %1635 = vpow2.f32 %v716_v34  ;;  %v1026_v42 = vrot.slane %v1017_v51, %v346_v19  ;;  %v704_v30 = vsub.f32 %v1991_v6, %v689_v21  ;;  %v705_v6 = vsub.f32 %v1994_v9, %v689_v21 }
 0x26a   :  { %1637 = vpow2.f32 %v718_v35  ;;  %v1032_v3 = vrot.slane %v1022_v39, %v1941_v16  ;;  %v732_v38 = vmul.f32 1.442695, %v703_v41 }
 0x26b   :  { %1639 = vpow2.f32 %v720_v4  ;;  %v1036_v53 = vrot.slane %v1026_v42, %v1941_v16  ;;  %v734_v63 = vmul.f32 1.442695, %v704_v30 }
 0x26c   :  { %1641 = vpow2.f32 %v722_v24 }
 0x26d   :  { %1643 = vpow2.f32 %v724_v25 }
 0x26e   :  { %v2036_v5 = vpop.eup %1625  ;;  %1645 = vpow2.f32 %v726_v29 }
 0x26f   :  { %v2038_v50 = vpop.eup %1627  ;;  %1647 = vpow2.f32 %v728_v33 }
 0x270   :  { %v738_v52 = vadd.f32 %v2038_v50, %v2036_v5  ;;  %v2042_v7 = vpop.eup %1629  ;;  %1649 = vpow2.f32 %v730_v47 }
 0x271   :  { %v2045_v60 = vpop.eup %1631  ;;  %1651 = vpow2.f32 %v732_v38 }
 0x272   :  { %v739_v56 = vadd.f32 %v2042_v7, %v738_v52  ;;  %v2048_v10 = vpop.eup %1633  ;;  %1653 = vpow2.f32 %v734_v63 }
 0x273   :  { %v2051_v12 = vpop.eup %1635 }
 0x274   :  { %v740_v8 = vadd.f32 %v2045_v60, %v739_v56  ;;  %v2054_v14 = vpop.eup %1637 }
 0x275   :  { %v2057_v18 = vpop.eup %1639 }
 0x276   :  { %v741_v11 = vadd.f32 %v2048_v10, %v740_v8  ;;  %v2069_v37 = vpop.eup %1641  ;;  %v736_v8 = vmul.f32 1.442695, %v705_v6 }
 0x277   :  { %v2071_v45 = vpop.eup %1643 }
 0x278   :  { %v742_v13 = vadd.f32 %v2051_v12, %v741_v11  ;;  %v747_v62 = vadd.f32 %v2071_v45, %v2069_v37  ;;  %v2082_v55 = vpop.eup %1645  ;;  %1655 = vpow2.f32 %v736_v8 }
 0x279   :  { %v2094_v36 = vpop.eup %1647 }
 0x27a   :  { %v743_v17 = vadd.f32 %v2054_v14, %v742_v13  ;;  %v748_v57 = vadd.f32 %v2082_v55, %v747_v62 }
 0x27c   :  { %v744_v20 = vadd.f32 %v2057_v18, %v743_v17  ;;  %v749_v9 = vadd.f32 %v2094_v36, %v748_v57 }
 0x27e   :  { %745 = vadd.xlane.f32.xlu1 %v744_v20  ;;  %v2113_v20 = vpop.eup %1649 }
 0x27f   :  { %v750_v28 = vadd.f32 %v2113_v20, %v749_v9 }
 0x2ab   :  { %v1109_v31 = vpop.f32.mrb[14].mxu1 }
 0x2ac   :  { %v1111_v32 = vpop.f32.mrb[15].mxu1  ;;  %v2089_v58 = vadd.f32 %v1109_v31, %v1032_v3 }
 0x2ad   :  { %v2092_v0 = vadd.f32 %v1111_v32, %v1036_v53  ;;  %v2132_v32 = vpop.eup %1651 }
 0x2ae   :  { %v751_v62 = vadd.f32 %v2132_v32, %v750_v28  ;;  %v2143_v30 = vpop.eup %1653 }
 0x2af   :  { %v1115_v43 = vpop.f32.mrb[16].mxu1 }
 0x2b0   :  { %v1117_v44 = vpop.f32.mrb[17].mxu1  ;;  %v2105_v52 = vadd.f32 %v1115_v43, %v1032_v3 }
 0x2b1   :  { %v2109_v11 = vadd.f32 %v1117_v44, %v1036_v53 }
 0x2b3   :  { %v1186_v48 = vpop.f32.mrb[18].mxu1  ;;  %v1263_v46 = vpop.f32.mrb[22].mxu0 }
 0x2b4   :  { %v1188_v1 = vpop.f32.mrb[19].mxu1  ;;  %v1265_v54 = vpop.f32.mrb[23].mxu0  ;;  %v2084_v15 = vadd.f32 %v1186_v48, %v1032_v3  ;;  %v2107_v56 = vadd.f32 %v1263_v46, %v1032_v3 }
 0x2b5   :  { %v2086_v19 = vadd.f32 %v1188_v1, %v1036_v53  ;;  %v2111_v13 = vadd.f32 %v1265_v54, %v1036_v53  ;;  %v752_v1 = vadd.f32 %v2143_v30, %v751_v62 }
 0x2b6   :  { %v1351_v40 = vmax.f32 %v2089_v58, %v2084_v15 }
 0x2b7   :  { %v1192_v59 = vpop.f32.mrb[20].mxu1  ;;  %v1269_v61 = vpop.f32.mrb[24].mxu0  ;;  %v1352_v35 = vmax.f32 %v2092_v0, %v2086_v19 }
 0x2b8   :  { %v1194_v16 = vpop.f32.mrb[21].mxu1  ;;  %v1271_v2 = vpop.f32.mrb[25].mxu0  ;;  %v2098_v34 = vadd.f32 %v1192_v59, %v1032_v3  ;;  %v1353_v21 = vmax.f32 %v1351_v40, %v2107_v56  ;;  %v2126_v29 = vadd.f32 %v1269_v61, %v1032_v3 }
 0x2b9   :  { %v2102_v4 = vadd.f32 %v1194_v16, %v1036_v53  ;;  %v1354_v25 = vmax.f32 %v1352_v35, %v2111_v13  ;;  %v2129_v31 = vadd.f32 %v1271_v2, %v1036_v53 }
 0x2ba   :  { %v1360_v22 = vmax.f32 %v2105_v52, %v2098_v34 }
 0x2bb   :  { %v1361_v26 = vmax.f32 %v2109_v11, %v2102_v4 }
 0x2bc   :  { %v1340_v17 = vpop.f32.mrb[22].mxu1  ;;  %v1362_v39 = vmax.f32 %v1360_v22, %v2126_v29 }
 0x2bd   :  { %v2118_v23 = vadd.f32 %v1340_v17, %v1032_v3  ;;  %v1342_v24 = vpop.f32.mrb[23].mxu1  ;;  %v1363_v47 = vmax.f32 %v1361_v26, %v2129_v31 }
 0x2be   :  { %v2123_v27 = vadd.f32 %v1342_v24, %v1036_v53 }
 0x2bf   :  { %v1355_v33 = vmax.f32 %v1353_v21, %v2118_v23 }
 0x2c0   :  { %v1356_v49 = vmax.f32 %v1354_v25, %v2123_v27  ;;  %v1346_v51 = vpop.f32.mrb[24].mxu1 }
 0x2c1   :  { %v2135_v43 = vadd.f32 %v1346_v51, %v1032_v3  ;;  %v1348_v41 = vpop.f32.mrb[25].mxu1  ;;  %v2146_v3 = vpop.eup %1655 }
 0x2c2   :  { %v2138_v42 = vadd.f32 %v1348_v41, %v1036_v53  ;;  %v1357_v44 = vmax.f32 %v1355_v33, %v1356_v49  ;;  %v753_v54 = vadd.f32 %v2146_v3, %v752_v1 }
 0x2c3   :  { %v1364_v48 = vmax.f32 %v1362_v39, %v2135_v43 }
 0x2c4   :  { %v1365_v46 = vmax.f32 %v1363_v47, %v2138_v42  ;;  %1358 = vmax.xlane.f32.xlu0 %v1357_v44 }
 0x2c6   :  { %v1366_v38 = vmax.f32 %v1364_v48, %v1365_v46 }
 0x2c8   :  { %1367 = vmax.xlane.f32.xlu0 %v1366_v38 }
 0x2cc   :  { %754 = vadd.xlane.f32.xlu0 %v753_v54 }
 0x30b   :  { %v746_v53 = vpop.xlane.xlu1 %745 }
 0x30c   :  { %1657 = vrcp.f32 %v746_v53 }
 0x316   :  { %v1658_v57 = vpop.eup %1657 }
 0x317   :  { %v758_v59 = vmul.f32 %v1658_v57, %v2036_v5  ;;  %v759_v61 = vmul.f32 %v1658_v57, %v2038_v50  ;;  %v760_v6 = vmul.f32 %v1658_v57, %v2042_v7  ;;  %v761_v63 = vmul.f32 %v1658_v57, %v2045_v60 }
 0x318   :  { %v762_v16 = vmul.f32 %v1658_v57, %v2048_v10  ;;  %v763_v2 = vmul.f32 %v1658_v57, %v2051_v12  ;;  %v764_v40 = vmul.f32 %v1658_v57, %v2054_v14  ;;  %v765_v35 = vmul.f32 %v1658_v57, %v2057_v18 }
 0x319   :  { %774 = vst [vmem:[%s2308_s7] sm:$0xff] %v758_v59  ;;  %775 = vst [vmem:[%s2308_s7 + $0x8] sm:$0xff] %v759_v61 }
 0x31a   :  { %776 = vst [vmem:[%s2308_s7 + $0x10] sm:$0xff] %v760_v6  ;;  %777 = vst [vmem:[%s2308_s7 + $0x18] sm:$0xff] %v761_v63 }
 0x31b   :  { %778 = vst [vmem:[%s2308_s7 + $0x20] sm:$0xff] %v762_v16  ;;  %779 = vst [vmem:[%s2308_s7 + $0x28] sm:$0xff] %v763_v2 }
 0x31c   :  { %780 = vst [vmem:[%s2308_s7 + $0x30] sm:$0xff] %v764_v40  ;;  %781 = vst [vmem:[%s2308_s7 + $0x38] sm:$0xff] %v765_v35 }
 0x351   :  { %v1359_v5 = vpop.xlane.xlu0 %1358 }
 0x352   :  { %v1369_v50 = vsub.f32 %v2089_v58, %v1359_v5  ;;  %v1370_v7 = vsub.f32 %v2092_v0, %v1359_v5  ;;  %v1371_v60 = vsub.f32 %v2084_v15, %v1359_v5  ;;  %v1372_v10 = vsub.f32 %v2086_v19, %v1359_v5 }
 0x353   :  { %v1373_v58 = vsub.f32 %v2107_v56, %v1359_v5  ;;  %v1374_v19 = vsub.f32 %v2111_v13, %v1359_v5  ;;  %v1376_v56 = vsub.f32 %v2123_v27, %v1359_v5 }
 0x354   :  { %v1385_v12 = vmul.f32 1.442695, %v1369_v50  ;;  %v1387_v14 = vmul.f32 1.442695, %v1370_v7  ;;  %v1389_v18 = vmul.f32 1.442695, %v1371_v60 }
 0x355   :  { %v1391_v9 = vmul.f32 1.442695, %v1372_v10  ;;  %v1368_v8 = vpop.xlane.xlu0 %1367  ;;  %v1395_v28 = vmul.f32 1.442695, %v1374_v19 }
 0x356   :  { %1659 = vpow2.f32 %v1385_v12  ;;  %v1377_v17 = vsub.f32 %v2105_v52, %v1368_v8  ;;  %v1378_v21 = vsub.f32 %v2109_v11, %v1368_v8  ;;  %v1379_v22 = vsub.f32 %v2098_v34, %v1368_v8 }
 0x357   :  { %1661 = vpow2.f32 %v1387_v14  ;;  %v1380_v24 = vsub.f32 %v2102_v4, %v1368_v8  ;;  %v1375_v52 = vsub.f32 %v2118_v23, %v1359_v5  ;;  %v1393_v11 = vmul.f32 1.442695, %v1373_v58 }
 0x358   :  { %1663 = vpow2.f32 %v1389_v18  ;;  %v1401_v0 = vmul.f32 1.442695, %v1377_v17  ;;  %v1403_v15 = vmul.f32 1.442695, %v1378_v21  ;;  %v1405_v25 = vmul.f32 1.442695, %v1379_v22 }
 0x359   :  { %1665 = vpow2.f32 %v1391_v9  ;;  %v755_v26 = vpop.xlane.xlu0 %754  ;;  %v1381_v34 = vsub.f32 %v2126_v29, %v1368_v8  ;;  %v1407_v33 = vmul.f32 1.442695, %v1380_v24  ;;  %v1382_v13 = vsub.f32 %v2129_v31, %v1368_v8 }
 0x35a   :  { %1667 = vpow2.f32 %v1401_v0  ;;  %v1397_v49 = vmul.f32 1.442695, %v1375_v52  ;;  %v1383_v4 = vsub.f32 %v2135_v43, %v1368_v8  ;;  %v1399_v23 = vmul.f32 1.442695, %v1376_v56 }
 0x35b   :  { %1669 = vpow2.f32 %v1403_v15  ;;  %v1409_v39 = vmul.f32 1.442695, %v1381_v34  ;;  %v1384_v47 = vsub.f32 %v2138_v42, %v1368_v8  ;;  %v1411_v31 = vmul.f32 1.442695, %v1382_v13 }
 0x35c   :  { %1671 = vrcp.f32 %v755_v26  ;;  %v1413_v62 = vmul.f32 1.442695, %v1383_v4 }
 0x35d   :  { %1673 = vpow2.f32 %v1405_v25  ;;  %v1415_v1 = vmul.f32 1.442695, %v1384_v47 }
 0x35e   :  { %1675 = vpow2.f32 %v1393_v11 }
 0x35f   :  { %1677 = vpow2.f32 %v1395_v28 }
 0x360   :  { %v2196_v51 = vpop.eup %1659  ;;  %1679 = vpow2.f32 %v1407_v33 }
 0x361   :  { %v2198_v41 = vpop.eup %1661  ;;  %1681 = vpow2.f32 %v1397_v49 }
 0x362   :  { %v2200_v29 = vpop.eup %1663  ;;  %v1417_v27 = vadd.f32 %v2198_v41, %v2196_v51  ;;  %1683 = vpow2.f32 %v1409_v39 }
 0x363   :  { %v1666_v44 = vpop.eup %1665  ;;  %1685 = vpow2.f32 %v1399_v23 }
 0x364   :  { %v2205_v43 = vpop.eup %1667  ;;  %v1418_v48 = vadd.f32 %v2200_v29, %v1417_v27  ;;  %1687 = vpow2.f32 %v1411_v31 }
 0x365   :  { %v2208_v46 = vpop.eup %1669  ;;  %1689 = vpow2.f32 %v1413_v62 }
 0x366   :  { %v1419_v38 = vadd.f32 %v1666_v44, %v1418_v48  ;;  %v1426_v54 = vadd.f32 %v2208_v46, %v2205_v43  ;;  %v1672_v42 = vpop.eup %1671  ;;  %1691 = vpow2.f32 %v1415_v1 }
 0x367   :  { %v2212_v53 = vpop.eup %1673  ;;  %v766_v57 = vmul.f32 %v1672_v42, %v2069_v37  ;;  %v767_v59 = vmul.f32 %v1672_v42, %v2071_v45  ;;  %v768_v61 = vmul.f32 %v1672_v42, %v2082_v55  ;;  %v769_v6 = vmul.f32 %v1672_v42, %v2094_v36 }
 0x368   :  { %v1676_v63 = vpop.eup %1675  ;;  %v770_v16 = vmul.f32 %v1672_v42, %v2113_v20  ;;  %v771_v2 = vmul.f32 %v1672_v42, %v2132_v32  ;;  %v772_v40 = vmul.f32 %v1672_v42, %v2143_v30  ;;  %v773_v35 = vmul.f32 %v1672_v42, %v2146_v3 }
 0x369   :  { %782 = vst [vmem:[%s2308_s7 + $0x40] sm:$0xff] %v766_v57  ;;  %783 = vst [vmem:[%s2308_s7 + $0x48] sm:$0xff] %v767_v59  ;;  %v1420_v37 = vadd.f32 %v1676_v63, %v1419_v38  ;;  %v1427_v45 = vadd.f32 %v2212_v53, %v1426_v54  ;;  %v1678_v55 = vpop.eup %1677 }
 0x36a   :  { %784 = vst [vmem:[%s2308_s7 + $0x50] sm:$0xff] %v768_v61  ;;  %785 = vst [vmem:[%s2308_s7 + $0x58] sm:$0xff] %v769_v6  ;;  %v1680_v36 = vpop.eup %1679 }
 0x36b   :  { %786 = vst [vmem:[%s2308_s7 + $0x60] sm:$0xff] %v770_v16  ;;  %787 = vst [vmem:[%s2308_s7 + $0x68] sm:$0xff] %v771_v2  ;;  %v1421_v20 = vadd.f32 %v1678_v55, %v1420_v37  ;;  %v1682_v32 = vpop.eup %1681  ;;  %v1428_v30 = vadd.f32 %v1680_v36, %v1427_v45 }
 0x36c   :  { %788 = vst [vmem:[%s2308_s7 + $0x70] sm:$0xff] %v772_v40  ;;  %789 = vst [vmem:[%s2308_s7 + $0x78] sm:$0xff] %v773_v35  ;;  %v1684_v3 = vpop.eup %1683 }
 0x36d   :  { %v1422_v5 = vadd.f32 %v1682_v32, %v1421_v20  ;;  %v1686_v50 = vpop.eup %1685  ;;  %v1429_v7 = vadd.f32 %v1684_v3, %v1428_v30 }
 0x36e   :  { %v1688_v60 = vpop.eup %1687 }
 0x36f   :  { %v1423_v10 = vadd.f32 %v1686_v50, %v1422_v5  ;;  %v1690_v12 = vpop.eup %1689  ;;  %v1430_v14 = vadd.f32 %v1688_v60, %v1429_v7 }
 0x370   :  { %v1692_v9 = vpop.eup %1691 }
 0x371   :  { %1424 = vadd.xlane.f32.xlu1 %v1423_v10  ;;  %v1431_v18 = vadd.f32 %v1690_v12, %v1430_v14 }
 0x373   :  { %v1432_v8 = vadd.f32 %v1692_v9, %v1431_v18 }
 0x375   :  { %1433 = vadd.xlane.f32.xlu0 %v1432_v8 }
 0x3fe   :  { %v1425_v17 = vpop.xlane.xlu1 %1424 }
 0x3ff   :  { %1693 = vrcp.f32 %v1425_v17 }
 0x402   :  { %v1434_v21 = vpop.xlane.xlu0 %1433 }
 0x403   :  { %1695 = vrcp.f32 %v1434_v21 }
 0x409   :  { %v1694_v22 = vpop.eup %1693 }
 0x40a   :  { %v1437_v58 = vmul.f32 %v1694_v22, %v2196_v51  ;;  %v1438_v0 = vmul.f32 %v1694_v22, %v2198_v41  ;;  %v1439_v15 = vmul.f32 %v1694_v22, %v2200_v29  ;;  %v1440_v19 = vmul.f32 %v1694_v22, %v1666_v44 }
 0x40b   :  { %v1441_v24 = vmul.f32 %v1694_v22, %v1676_v63  ;;  %v1442_v25 = vmul.f32 %v1694_v22, %v1678_v55  ;;  %v1443_v26 = vmul.f32 %v1694_v22, %v1682_v32  ;;  %v1444_v52 = vmul.f32 %v1694_v22, %v1686_v50 }
 0x40c   :  { %1514 = vst [vmem:[%s2308_s7 + $0x80] sm:$0xff] %v1437_v58  ;;  %1515 = vst [vmem:[%s2308_s7 + $0x88] sm:$0xff] %v1438_v0 }
 0x40d   :  { %1516 = vst [vmem:[%s2308_s7 + $0x90] sm:$0xff] %v1439_v15  ;;  %1517 = vst [vmem:[%s2308_s7 + $0x98] sm:$0xff] %v1440_v19  ;;  %v1696_v11 = vpop.eup %1695 }
 0x40e   :  { %1518 = vst [vmem:[%s2308_s7 + $0xa0] sm:$0xff] %v1441_v24  ;;  %1519 = vst [vmem:[%s2308_s7 + $0xa8] sm:$0xff] %v1442_v25  ;;  %v1445_v34 = vmul.f32 %v1696_v11, %v2205_v43  ;;  %v1446_v56 = vmul.f32 %v1696_v11, %v2208_v46  ;;  %v1447_v28 = vmul.f32 %v1696_v11, %v2212_v53 }
 0x40f   :  { %1520 = vst [vmem:[%s2308_s7 + $0xb0] sm:$0xff] %v1443_v26  ;;  %1521 = vst [vmem:[%s2308_s7 + $0xb8] sm:$0xff] %v1444_v52  ;;  %v1448_v33 = vmul.f32 %v1696_v11, %v1680_v36  ;;  %v1449_v13 = vmul.f32 %v1696_v11, %v1684_v3  ;;  %v1450_v49 = vmul.f32 %v1696_v11, %v1688_v60 }
 0x410   :  { %v1451_v4 = vmul.f32 %v1696_v11, %v1690_v12  ;;  %v1452_v51 = vmul.f32 %v1696_v11, %v1692_v9  ;;  %1522 = vst [vmem:[%s2308_s7 + $0xc0] sm:$0xff] %v1445_v34  ;;  %1523 = vst [vmem:[%s2308_s7 + $0xc8] sm:$0xff] %v1446_v56 }
 0x411   :  { %1524 = vst [vmem:[%s2308_s7 + $0xd0] sm:$0xff] %v1447_v28  ;;  %1525 = vst [vmem:[%s2308_s7 + $0xd8] sm:$0xff] %v1448_v33 }
 0x412   :  { %1526 = vst [vmem:[%s2308_s7 + $0xe0] sm:$0xff] %v1449_v13  ;;  %1527 = vst [vmem:[%s2308_s7 + $0xe8] sm:$0xff] %v1450_v49 }
 0x413   :  { %1528 = vst [vmem:[%s2308_s7 + $0xf0] sm:$0xff] %v1451_v4  ;;  %1529 = vst [vmem:[%s2308_s7 + $0xf8] sm:$0xff] %v1452_v51 }

</bundles_post_ra>
